<compile_context>
chip_gen: v5e
topology: v5e:2x2
jax: 0.10.0
libtpu: 0.0.40
codegen_flags: <defaults>
</compile_context>

<pallas_src>
import jax
import jax.numpy as jnp
from jax.experimental import pallas as pl
from jax.experimental.pallas import tpu as pltpu

_LANE = 128
_SUBLANE_QUANTUM = {4: 8, 2: 16, 1: 32}   # itemsize -> sublane alignment
_TILE_BYTES = 4 << 20                     # ~4 MiB per x tile (streaming sweet spot)


def _inv_affine_kernel(loc_ref, inv_scale_ref, x_ref, o_ref):
    # loc_ref / inv_scale_ref: (TR, 1); x_ref / o_ref: (TR, TC)
    # (TR, 1) broadcasts across the lane axis; one VPU sub + mul per element.
    o_ref[...] = (x_ref[...] - loc_ref[...]) * inv_scale_ref[...]


def _largest_divisor_multiple(dim, quantum, cap):
    """Largest multiple of `quantum` that divides `dim` and is <= cap.

    Assumes dim % quantum == 0; always returns at least `quantum`.
    """
    cap = min(cap, dim)
    best = quantum
    b = quantum
    while b <= cap:
        if dim % b == 0:
            best = b
        b += quantum
    return best


def inv_affine(x, loc, scale, *, use_pallas=None):
    """x: (N, C, H, W); loc, scale: (C,) per-channel. Returns (x - loc) / scale."""
    N, C, H, W = x.shape
    dtype = x.dtype
    itemsize = jnp.dtype(dtype).itemsize

    loc = loc.astype(dtype)
    inv_scale = (1.0 / scale.astype(jnp.float32)).astype(dtype)
    # TODO(synk): uses (x - loc) * (1/scale); ~1 ulp from a true per-element divide.

    if use_pallas is None:
        # Below ~1 MiB the fixed pallas_call overhead dominates; let XLA do it.
        use_pallas = x.size * itemsize >= (1 << 20)
    if not use_pallas:
        return (x - loc[None, :, None, None]) * inv_scale[None, :, None, None]

    q = _SUBLANE_QUANTUM.get(itemsize, 8)

    # ---- pick a lane-dense 2-D streaming view --------------------------------
    hw = H * W
    if hw % _LANE == 0 or W % _LANE != 0:
        # Default view (padded below if hw is not a 128 multiple).
        rows, cols = N * C, hw
        x2 = x.reshape(rows, cols)
        loc_r = jnp.tile(loc, N)
        inv_r = jnp.tile(inv_scale, N)
    else:
        # H*W unaligned but W itself is a 128 multiple: flatten to (N*C*H, W).
        rows, cols = N * C * H, W
        x2 = x.reshape(rows, cols)
        loc_r = jnp.tile(jnp.repeat(loc, H), N)
        inv_r = jnp.tile(jnp.repeat(inv_scale, H), N)

    orig_rows, orig_cols = rows, cols

    # ---- pad to (q, 128)-aligned dims (keeps stores unmasked, tiles bounded) --
    rows_p = -(-rows // q) * q
    cols_p = -(-cols // _LANE) * _LANE
    if rows_p != rows or cols_p != cols:
        x2 = jnp.pad(x2, ((0, rows_p - rows), (0, cols_p - cols)))
        loc_r = jnp.pad(loc_r, (0, rows_p - rows))
        inv_r = jnp.pad(inv_r, (0, rows_p - rows), constant_values=1)
        rows, cols = rows_p, cols_p

    loc_rows = loc_r.reshape(rows, 1)
    inv_rows = inv_r.reshape(rows, 1)

    # ---- tile sizing from a byte budget (grow lanes first) -------------------
    TC = _largest_divisor_multiple(cols, _LANE, 4096)
    tr_budget = max(q, (_TILE_BYTES // (TC * itemsize)) // q * q)
    TR = _largest_divisor_multiple(rows, q, min(tr_budget, 512))
    # Keep >=2 steps on the leading "parallel" axis so v7x's 2nd TC gets work.
    if rows // TR < 2 and rows >= 2 * q:
        TR = _largest_divisor_multiple(rows, q, rows // 2)

    grid = (rows // TR, cols // TC)   # cols = inner axis -> params not re-DMA'd

    out2 = pl.pallas_call(
        _inv_affine_kernel,
        out_shape=jax.ShapeDtypeStruct((rows, cols), dtype),
        grid=grid,
        in_specs=[
            pl.BlockSpec((TR, 1), lambda i, j: (i, 0)),   # per-row loc
            pl.BlockSpec((TR, 1), lambda i, j: (i, 0)),   # per-row 1/scale
            pl.BlockSpec((TR, TC), lambda i, j: (i, j)),  # x tile
        ],
        out_specs=pl.BlockSpec((TR, TC), lambda i, j: (i, j)),
        compiler_params=pltpu.CompilerParams(
            # Both axes independent; v7x shards "parallel" axes across its 2 TCs.
            dimension_semantics=("parallel", "parallel"),
            # ~4 buffers x <=4 MiB tiles + params: allow 32 MiB of scoped VMEM
            # (fits v5e/v6e 128 MiB and v7x 64 MiB physical).
            vmem_limit_bytes=32 << 20,
        ),
        cost_estimate=pl.CostEstimate(
            flops=2 * rows * cols,
            bytes_accessed=2 * rows * cols * itemsize + 2 * rows * itemsize,
            transcendentals=0,
        ),
    )(loc_rows, inv_rows, x2)

    return out2[:orig_rows, :orig_cols].reshape(N, C, H, W)


if __name__ == "__main__":
    key = jax.random.PRNGKey(0)
    kx, kl, ks = jax.random.split(key, 3)

    N, C, H, W = 2, 4, 16, 16
    x = jax.random.normal(kx, (N, C, H, W), dtype=jnp.float32)

    # Deterministic synthetic per-channel "mean" and "std".
    loc = jax.random.normal(kl, (C,), dtype=jnp.float32)
    scale = jax.random.uniform(ks, (C,), dtype=jnp.float32, minval=0.5, maxval=2.0)

    # Force the Pallas path at this small demo size so the kernel is exercised.
    out = inv_affine(x, loc, scale, use_pallas=True)
    out = jax.block_until_ready(out)

    ref = (x - loc[None, :, None, None]) / scale[None, :, None, None]
    assert jnp.allclose(out, ref, atol=1e-6, rtol=1e-6), "mismatch vs reference"

    print("KERNEL_OK")
</pallas_src>

<mosaic_0001>
module attributes {stable_mosaic.version = 11 : i64} {
  func.func @_inv_affine_kernel(%arg0: i32, %arg1: i32, %arg2: memref<8x1xf32, #tpu.memory_space<vmem>>, %arg3: memref<8x1xf32, #tpu.memory_space<vmem>>, %arg4: memref<8x256xf32, #tpu.memory_space<vmem>>, %arg5: memref<8x256xf32, #tpu.memory_space<vmem>>) attributes {dimension_semantics = [#tpu.dimension_semantics<parallel>, #tpu.dimension_semantics<parallel>], iteration_bounds = array<i64: 1, 1>, scalar_prefetch = 0 : i64, scratch_operands = 0 : i64, tpu.core_type = #tpu.core_type<tc>, window_params = [{transform_indices = @transform_0, window_bounds = array<i64: 8, 1>}, {transform_indices = @transform_1, window_bounds = array<i64: 8, 1>}, {transform_indices = @transform_2, window_bounds = array<i64: 8, 256>}, {transform_indices = @transform_3, window_bounds = array<i64: 8, 256>}]} {
    %c0 = arith.constant 0 : index
    %c0_0 = arith.constant 0 : index
    %0 = vector.load %arg4[%c0, %c0_0] : memref<8x256xf32, #tpu.memory_space<vmem>>, vector<8x256xf32>
    %c0_1 = arith.constant 0 : index
    %c0_2 = arith.constant 0 : index
    %1 = vector.load %arg2[%c0_1, %c0_2] : memref<8x1xf32, #tpu.memory_space<vmem>>, vector<8x1xf32>
    %2 = vector.broadcast %1 : vector<8x1xf32> to vector<8x256xf32>
    %3 = arith.subf %0, %2 : vector<8x256xf32>
    %c0_3 = arith.constant 0 : index
    %c0_4 = arith.constant 0 : index
    %4 = vector.load %arg3[%c0_3, %c0_4] : memref<8x1xf32, #tpu.memory_space<vmem>>, vector<8x1xf32>
    %5 = vector.broadcast %4 : vector<8x1xf32> to vector<8x256xf32>
    %6 = arith.mulf %3, %5 : vector<8x256xf32>
    %c0_5 = arith.constant 0 : index
    %c0_6 = arith.constant 0 : index
    %7 = vector.load %arg5[%c0_5, %c0_6] : memref<8x256xf32, #tpu.memory_space<vmem>>, vector<8x256xf32>
    tpu.vector_store %arg5[%c0_5, %c0_6], %6 {strides = array<i32>} : memref<8x256xf32, #tpu.memory_space<vmem>>, vector<8x256xf32>,
    return
  }
  func.func @transform_0(%arg0: i32, %arg1: i32) -> (i32, i32) {
    %c0_i32 = arith.constant 0 : i32
    %c0_i32_0 = arith.constant 0 : i32
    return %arg0, %c0_i32 : i32, i32
  }
  func.func @transform_1(%arg0: i32, %arg1: i32) -> (i32, i32) {
    %c0_i32 = arith.constant 0 : i32
    %c0_i32_0 = arith.constant 0 : i32
    return %arg0, %c0_i32 : i32, i32
  }
  func.func @transform_2(%arg0: i32, %arg1: i32) -> (i32, i32) {
    %c0_i32 = arith.constant 0 : i32
    return %arg0, %arg1 : i32, i32
  }
  func.func @transform_3(%arg0: i32, %arg1: i32) -> (i32, i32) {
    %c0_i32 = arith.constant 0 : i32
    return %arg0, %arg1 : i32, i32
  }
}

</mosaic_0001>

<bundles_post_ra>
// kernel: tpu_custom_call.1
= control target key start
LH: loop header
LB: loop body
LE: loop exit
PB: predicated region body
PF: predicated region fallthrough
CT: control target
= control target key end

     0   :  { %s117_s0 = inlined_call_operand.vmem [shape: f32[8,1], index: 0, kind: input, shape index: {}]   ;;  %s118_s1 = inlined_call_operand.vmem [shape: f32[8,1], index: 1, kind: input, shape index: {}]   ;;  %s119_s2 = inlined_call_operand.vmem [shape: f32[8,256], index: 2, kind: input, shape index: {}]   ;;  %s120_s3 = inlined_call_operand.hbm [shape: f32[8,256], index: 3, kind: output, shape index: {}]  }
   0x1   :  { %v17_v0 = vld [vmem:[%s117_s0] sm:$0xff] }
   0x2   :  { %8 = vsyncpa [#allocation3], 0  ;;  %v80_v1 = vmov 0   ;;  %v25_v2 = vld [vmem:[%s118_s1] sm:$0xff]  ;;  %v16_v5 = vld [vmem:[%s119_s2 + $0x8] sm:$0xff]  ;;  %s81_s0 = smov [#allocation2]  }
   0x3   :  { %53 = vset.pattern.permute.xlu0 %v80_v1  ;;  %v15_v4 = vld [vmem:[%s119_s2] sm:$0xff]  ;;  %s40_s20 = sshll.u32 %s81_s0, 4  ;;  %s42_s23 = sshll.u32 %s120_s3, 4  ;;  %s41_s20 = int_to_ptr.vmem [resolvable:$true] %s40_s20  ;;  %s43_s23 = int_to_ptr.hbm [resolvable:$true] %s42_s23 }
   0x4   :  { %20 = vperm.xlu0 %53, %v17_v0  }
   0xc   :  { %28 = vperm.xlu0 %53, %v25_v2  }
  0x76   :  { %v21_v3 = vpop.permute.xlu0 %20 }
  0x77   :  { %v23_v6 = vsub.f32 %v15_v4, %v21_v3  ;;  %v24_v7 = vsub.f32 %v16_v5, %v21_v3 }
  0x7e   :  { %v29_v8 = vpop.permute.xlu0 %28 }
  0x7f   :  { %v31_v9 = vmul.f32 %v29_v8, %v23_v6  ;;  %v32_v10 = vmul.f32 %v29_v8, %v24_v7 }
  0x81   :  { %33 = vst [vmem:[#allocation2] sm:$0xff] %v31_v9 }
  0x82   :  { %34 = vst [vmem:[#allocation2 + $0x8] sm:$0xff] %v32_v10 }
  0x83   :  { %45 = dma.vmem_to_hbm [thread:$0]  %s41_s20, 256, %s43_s23, [#allocation3]  }
  0x84   :  { %78 = dma.done.wait [#allocation3], 256  }
  0x85   :  { %79 = vsyncadd [#allocation3], 4294967040 }
  0x86   :  { %50 = vsyncpa [#allocation3], 1 }

</bundles_post_ra>
